<compile_context>
chip_gen: v7x
topology: tpu7x:2x2x1
jax: 0.10.0
libtpu: 0.0.40
codegen_flags: <defaults>
</compile_context>

<pallas_src>
import functools

import jax
import jax.numpy as jnp
from jax.experimental import pallas as pl
from jax.experimental.pallas import tpu as pltpu

# Logical layer dims (PyTorch Linear_Net): 64 -> 128 -> 256 -> 64 -> 10
D_IN, D_H1, D_H2, D_H3, D_OUT = 64, 128, 256, 64, 10
# MXU / lane aligned (padded) dims used inside the kernel.
P_IN, P_H1, P_H2, P_H3, P_OUT = 128, 128, 256, 128, 128


def _mlp_kernel(x_ref,
                w1_ref, b1_ref,
                w2_ref, b2_ref,
                w3_ref, b3_ref,
                w4_ref, b4_ref,
                o_ref):
    """One batch tile (TILE_B, 128) through the whole 4-layer MLP, all in VMEM."""
    x = x_ref[...]                                                    # bf16 (TILE_B, 128)

    h = jnp.dot(x, w1_ref[...], preferred_element_type=jnp.float32)  # MXU, f32 acc
    h = jnp.maximum(h + b1_ref[...], 0.0)                            # bias+ReLU in f32 (VPU)
    h = h.astype(jnp.bfloat16)

    h = jnp.dot(h, w2_ref[...], preferred_element_type=jnp.float32)
    h = jnp.maximum(h + b2_ref[...], 0.0)
    h = h.astype(jnp.bfloat16)

    h = jnp.dot(h, w3_ref[...], preferred_element_type=jnp.float32)
    h = jnp.maximum(h + b3_ref[...], 0.0)
    h = h.astype(jnp.bfloat16)

    out = jnp.dot(h, w4_ref[...], preferred_element_type=jnp.float32) + b4_ref[...]
    o_ref[...] = out.astype(o_ref.dtype)                             # lane-dense (TILE_B, 128)


def _round_up(n, m):
    return (n + m - 1) // m * m


@functools.partial(jax.jit, static_argnames=("tile_b",))
def linear_net_forward(x, params, tile_b=256):
    """x: (B, 64) float32.  params: padded bf16 weights / f32 biases from pad_params().

    Returns (B, 10) float32 logits — identical semantics to Linear_Net.forward on
    X.view(B, -1), modulo bf16 weight/activation rounding.
    """
    B = x.shape[0]
    b_pad = _round_up(B, tile_b)

    # Zero-pad batch rows and the K=64 feature axis up to 128, cast to bf16.
    x_p = jnp.zeros((b_pad, P_IN), jnp.bfloat16)
    x_p = x_p.at[:B, :D_IN].set(x.astype(jnp.bfloat16))

    w1, b1 = params["w1"], params["b1"]
    w2, b2 = params["w2"], params["b2"]
    w3, b3 = params["w3"], params["b3"]
    w4, b4 = params["w4"], params["b4"]

    # Weights/biases: full-array blocks with a constant index_map so Pallas keeps
    # a single resident VMEM copy across all batch-tile grid steps.
    def resident(a):
        return pl.BlockSpec(a.shape, lambda i: (0,) * a.ndim)

    flops = 2 * B * (D_IN * D_H1 + D_H1 * D_H2 + D_H2 * D_H3 + D_H3 * D_OUT)
    bytes_w = sum(int(params[k].size) * params[k].dtype.itemsize for k in params)
    cost = pl.CostEstimate(
        flops=flops,
        transcendentals=0,
        bytes_accessed=bytes_w + x_p.size * 2 + b_pad * P_OUT * 4,
    )

    out = pl.pallas_call(
        _mlp_kernel,
        out_shape=jax.ShapeDtypeStruct((b_pad, P_OUT), jnp.float32),
        grid=(b_pad // tile_b,),
        in_specs=[
            pl.BlockSpec((tile_b, P_IN), lambda i: (i, 0)),
            resident(w1), resident(b1),
            resident(w2), resident(b2),
            resident(w3), resident(b3),
            resident(w4), resident(b4),
        ],
        out_specs=pl.BlockSpec((tile_b, P_OUT), lambda i: (i, 0)),
        compiler_params=pltpu.CompilerParams(
            dimension_semantics=("parallel",),        # shard batch tiles across TCs (v7x)
            vmem_limit_bytes=32 * 1024 * 1024,        # fits v7x's smaller per-TC VMEM
        ),
        cost_estimate=cost,
    )(x_p, w1, b1, w2, b2, w3, b3, w4, b4)

    return out[:B, :D_OUT]


def init_params(key):
    """Logical-shape f32 params, PyTorch nn.Linear default init, stored (in, out)."""
    dims = [(D_IN, D_H1), (D_H1, D_H2), (D_H2, D_H3), (D_H3, D_OUT)]
    params = {}
    for i, (fan_in, fan_out) in enumerate(dims, start=1):
        key, kw, kb = jax.random.split(key, 3)
        bound = 1.0 / jnp.sqrt(fan_in)  # uniform(-1/sqrt(in), 1/sqrt(in))
        params[f"w{i}"] = jax.random.uniform(
            kw, (fan_in, fan_out), jnp.float32, minval=-bound, maxval=bound)
        params[f"b{i}"] = jax.random.uniform(
            kb, (1, fan_out), jnp.float32, minval=-bound, maxval=bound)
    return params


def pad_params(raw):
    """Zero-pad every layer to MXU/lane-aligned shapes; weights bf16, biases f32.

    Pad regions are zero, so the padded network computes exactly the logical
    network on the [:, :10] slice of the output.
    """
    pads = {1: (P_IN, P_H1), 2: (P_H1, P_H2), 3: (P_H2, P_H3), 4: (P_H3, P_OUT)}
    out = {}
    for i, (kp, np_) in pads.items():
        w = raw[f"w{i}"]
        b = raw[f"b{i}"]
        wp = jnp.zeros((kp, np_), jnp.bfloat16)
        wp = wp.at[:w.shape[0], :w.shape[1]].set(w.astype(jnp.bfloat16))
        bp = jnp.zeros((1, np_), jnp.float32)
        bp = bp.at[:, :b.shape[1]].set(b)
        out[f"w{i}"] = wp
        out[f"b{i}"] = bp
    return out


def reference_forward(x, p):
    """Pure-JAX f32 reference using the same bf16-rounded weights the kernel sees."""
    w1 = p["w1"][:D_IN, :D_H1].astype(jnp.float32); b1 = p["b1"][:, :D_H1]
    w2 = p["w2"][:D_H1, :D_H2].astype(jnp.float32); b2 = p["b2"][:, :D_H2]
    w3 = p["w3"][:D_H2, :D_H3].astype(jnp.float32); b3 = p["b3"][:, :D_H3]
    w4 = p["w4"][:D_H3, :D_OUT].astype(jnp.float32); b4 = p["b4"][:, :D_OUT]
    h = jnp.maximum(x @ w1 + b1, 0.0)
    h = jnp.maximum(h @ w2 + b2, 0.0)
    h = jnp.maximum(h @ w3 + b3, 0.0)
    return h @ w4 + b4


# TODO(synk): train_step (CrossEntropyLoss / Adam / softmax confidence) is training
# machinery outside the forward pass and is not implemented as a Pallas kernel.


if __name__ == "__main__":
    key = jax.random.PRNGKey(0)
    key, kx = jax.random.split(key)

    B = 8  # small demo batch; input features = 64 as implied by lin1
    x = jax.random.normal(kx, (B, D_IN), dtype=jnp.float32)

    raw = init_params(key)
    params = pad_params(raw)

    # tile_b=128 keeps the demo pad small while still filling an MXU pass height;
    # use the default tile_b=256 for real (large-batch) workloads on v6e/v7x.
    out = linear_net_forward(x, params, tile_b=128)
    out = jax.block_until_ready(out)

    ref = reference_forward(x, params)
    assert out.shape == (B, D_OUT)
    # bf16 weights + bf16 intermediate activations => loosened tolerance vs. f32 ref.
    max_err = float(jnp.max(jnp.abs(out - ref)))
    assert jnp.allclose(out, ref, atol=2e-2, rtol=2e-2), (
        f"mismatch vs. JAX reference (max abs err = {max_err})")

    print("KERNEL_OK")
</pallas_src>

<mosaic_0001>
module attributes {stable_mosaic.version = 11 : i64} {
  func.func @_mlp_kernel(%arg0: i32, %arg1: memref<128x128xbf16, #tpu.memory_space<vmem>>, %arg2: memref<128x128xbf16, #tpu.memory_space<vmem>>, %arg3: memref<1x128xf32, #tpu.memory_space<vmem>>, %arg4: memref<128x256xbf16, #tpu.memory_space<vmem>>, %arg5: memref<1x256xf32, #tpu.memory_space<vmem>>, %arg6: memref<256x128xbf16, #tpu.memory_space<vmem>>, %arg7: memref<1x128xf32, #tpu.memory_space<vmem>>, %arg8: memref<128x128xbf16, #tpu.memory_space<vmem>>, %arg9: memref<1x128xf32, #tpu.memory_space<vmem>>, %arg10: memref<128x128xf32, #tpu.memory_space<vmem>>) attributes {dimension_semantics = [#tpu.dimension_semantics<parallel>], iteration_bounds = array<i64: 1>, scalar_prefetch = 0 : i64, scratch_operands = 0 : i64, tpu.core_type = #tpu.core_type<tc>, window_params = [{transform_indices = @transform_0, window_bounds = array<i64: 128, 128>}, {pipeline_mode = #tpu.pipeline_mode<synchronous>, transform_indices = @transform_1, window_bounds = array<i64: 128, 128>}, {pipeline_mode = #tpu.pipeline_mode<synchronous>, transform_indices = @transform_2, window_bounds = array<i64: 1, 128>}, {pipeline_mode = #tpu.pipeline_mode<synchronous>, transform_indices = @transform_3, window_bounds = array<i64: 128, 256>}, {pipeline_mode = #tpu.pipeline_mode<synchronous>, transform_indices = @transform_4, window_bounds = array<i64: 1, 256>}, {pipeline_mode = #tpu.pipeline_mode<synchronous>, transform_indices = @transform_5, window_bounds = array<i64: 256, 128>}, {pipeline_mode = #tpu.pipeline_mode<synchronous>, transform_indices = @transform_6, window_bounds = array<i64: 1, 128>}, {pipeline_mode = #tpu.pipeline_mode<synchronous>, transform_indices = @transform_7, window_bounds = array<i64: 128, 128>}, {pipeline_mode = #tpu.pipeline_mode<synchronous>, transform_indices = @transform_8, window_bounds = array<i64: 1, 128>}, {transform_indices = @transform_9, window_bounds = array<i64: 128, 128>}]} {
    %c0 = arith.constant 0 : index
    %c0_0 = arith.constant 0 : index
    %0 = vector.load %arg1[%c0, %c0_0] : memref<128x128xbf16, #tpu.memory_space<vmem>>, vector<128x128xbf16>
    %c0_1 = arith.constant 0 : index
    %c0_2 = arith.constant 0 : index
    %1 = vector.load %arg2[%c0_1, %c0_2] : memref<128x128xbf16, #tpu.memory_space<vmem>>, vector<128x128xbf16>
    %cst = arith.constant dense<0.000000e+00> : vector<128x128xf32>
    %2 = tpu.matmul %0, %1, %cst {dimension_numbers = #tpu.dot_dimension_numbers<[1], [0], [0], [1], [0, 0, 1, 1], [], []>} : vector<128x128xbf16>, vector<128x128xbf16>, vector<128x128xf32> -> vector<128x128xf32>
    %c0_3 = arith.constant 0 : index
    %c0_4 = arith.constant 0 : index
    %3 = vector.load %arg3[%c0_3, %c0_4] : memref<1x128xf32, #tpu.memory_space<vmem>>, vector<1x128xf32>
    %4 = vector.broadcast %3 : vector<1x128xf32> to vector<128x128xf32>
    %5 = arith.addf %2, %4 : vector<128x128xf32>
    %cst_5 = arith.constant 0.000000e+00 : f32
    %6 = vector.broadcast %cst_5 : f32 to vector<128x128xf32>
    %7 = arith.maximumf %5, %6 : vector<128x128xf32>
    %8 = arith.truncf %7 : vector<128x128xf32> to vector<128x128xbf16>
    %c0_6 = arith.constant 0 : index
    %c0_7 = arith.constant 0 : index
    %9 = vector.load %arg4[%c0_6, %c0_7] : memref<128x256xbf16, #tpu.memory_space<vmem>>, vector<128x256xbf16>
    %cst_8 = arith.constant dense<0.000000e+00> : vector<128x256xf32>
    %10 = tpu.matmul %8, %9, %cst_8 {dimension_numbers = #tpu.dot_dimension_numbers<[1], [0], [0], [1], [0, 0, 1, 1], [], []>} : vector<128x128xbf16>, vector<128x256xbf16>, vector<128x256xf32> -> vector<128x256xf32>
    %c0_9 = arith.constant 0 : index
    %c0_10 = arith.constant 0 : index
    %11 = vector.load %arg5[%c0_9, %c0_10] : memref<1x256xf32, #tpu.memory_space<vmem>>, vector<1x256xf32>
    %12 = vector.broadcast %11 : vector<1x256xf32> to vector<128x256xf32>
    %13 = arith.addf %10, %12 : vector<128x256xf32>
    %cst_11 = arith.constant 0.000000e+00 : f32
    %14 = vector.broadcast %cst_11 : f32 to vector<128x256xf32>
    %15 = arith.maximumf %13, %14 : vector<128x256xf32>
    %16 = arith.truncf %15 : vector<128x256xf32> to vector<128x256xbf16>
    %c0_12 = arith.constant 0 : index
    %c0_13 = arith.constant 0 : index
    %17 = vector.load %arg6[%c0_12, %c0_13] : memref<256x128xbf16, #tpu.memory_space<vmem>>, vector<256x128xbf16>
    %cst_14 = arith.constant dense<0.000000e+00> : vector<128x128xf32>
    %18 = tpu.matmul %16, %17, %cst_14 {dimension_numbers = #tpu.dot_dimension_numbers<[1], [0], [0], [1], [0, 0, 1, 1], [], []>} : vector<128x256xbf16>, vector<256x128xbf16>, vector<128x128xf32> -> vector<128x128xf32>
    %c0_15 = arith.constant 0 : index
    %c0_16 = arith.constant 0 : index
    %19 = vector.load %arg7[%c0_15, %c0_16] : memref<1x128xf32, #tpu.memory_space<vmem>>, vector<1x128xf32>
    %20 = vector.broadcast %19 : vector<1x128xf32> to vector<128x128xf32>
    %21 = arith.addf %18, %20 : vector<128x128xf32>
    %cst_17 = arith.constant 0.000000e+00 : f32
    %22 = vector.broadcast %cst_17 : f32 to vector<128x128xf32>
    %23 = arith.maximumf %21, %22 : vector<128x128xf32>
    %24 = arith.truncf %23 : vector<128x128xf32> to vector<128x128xbf16>
    %c0_18 = arith.constant 0 : index
    %c0_19 = arith.constant 0 : index
    %25 = vector.load %arg8[%c0_18, %c0_19] : memref<128x128xbf16, #tpu.memory_space<vmem>>, vector<128x128xbf16>
    %cst_20 = arith.constant dense<0.000000e+00> : vector<128x128xf32>
    %26 = tpu.matmul %24, %25, %cst_20 {dimension_numbers = #tpu.dot_dimension_numbers<[1], [0], [0], [1], [0, 0, 1, 1], [], []>} : vector<128x128xbf16>, vector<128x128xbf16>, vector<128x128xf32> -> vector<128x128xf32>
    %c0_21 = arith.constant 0 : index
    %c0_22 = arith.constant 0 : index
    %27 = vector.load %arg9[%c0_21, %c0_22] : memref<1x128xf32, #tpu.memory_space<vmem>>, vector<1x128xf32>
    %28 = vector.broadcast %27 : vector<1x128xf32> to vector<128x128xf32>
    %29 = arith.addf %26, %28 : vector<128x128xf32>
    %c0_23 = arith.constant 0 : index
    %c0_24 = arith.constant 0 : index
    %30 = vector.load %arg10[%c0_23, %c0_24] : memref<128x128xf32, #tpu.memory_space<vmem>>, vector<128x128xf32>
    tpu.vector_store %arg10[%c0_23, %c0_24], %29 {strides = array<i32>} : memref<128x128xf32, #tpu.memory_space<vmem>>, vector<128x128xf32>,
    return
  }
  func.func @transform_0(%arg0: i32) -> (i32, i32) {
    %c0_i32 = arith.constant 0 : i32
    %c0_i32_0 = arith.constant 0 : i32
    return %arg0, %c0_i32 : i32, i32
  }
  func.func @transform_1(%arg0: i32) -> (i32, i32) {
    %c0_i32 = arith.constant 0 : i32
    %c0_i32_0 = arith.constant 0 : i32
    %c0_i32_1 = arith.constant 0 : i32
    return %c0_i32, %c0_i32_0 : i32, i32
  }
  func.func @transform_2(%arg0: i32) -> (i32, i32) {
    %c0_i32 = arith.constant 0 : i32
    %c0_i32_0 = arith.constant 0 : i32
    %c0_i32_1 = arith.constant 0 : i32
    return %c0_i32, %c0_i32_0 : i32, i32
  }
  func.func @transform_3(%arg0: i32) -> (i32, i32) {
    %c0_i32 = arith.constant 0 : i32
    %c0_i32_0 = arith.constant 0 : i32
    %c0_i32_1 = arith.constant 0 : i32
    return %c0_i32, %c0_i32_0 : i32, i32
  }
  func.func @transform_4(%arg0: i32) -> (i32, i32) {
    %c0_i32 = arith.constant 0 : i32
    %c0_i32_0 = arith.constant 0 : i32
    %c0_i32_1 = arith.constant 0 : i32
    return %c0_i32, %c0_i32_0 : i32, i32
  }
  func.func @transform_5(%arg0: i32) -> (i32, i32) {
    %c0_i32 = arith.constant 0 : i32
    %c0_i32_0 = arith.constant 0 : i32
    %c0_i32_1 = arith.constant 0 : i32
    return %c0_i32, %c0_i32_0 : i32, i32
  }
  func.func @transform_6(%arg0: i32) -> (i32, i32) {
    %c0_i32 = arith.constant 0 : i32
    %c0_i32_0 = arith.constant 0 : i32
    %c0_i32_1 = arith.constant 0 : i32
    return %c0_i32, %c0_i32_0 : i32, i32
  }
  func.func @transform_7(%arg0: i32) -> (i32, i32) {
    %c0_i32 = arith.constant 0 : i32
    %c0_i32_0 = arith.constant 0 : i32
    %c0_i32_1 = arith.constant 0 : i32
    return %c0_i32, %c0_i32_0 : i32, i32
  }
  func.func @transform_8(%arg0: i32) -> (i32, i32) {
    %c0_i32 = arith.constant 0 : i32
    %c0_i32_0 = arith.constant 0 : i32
    %c0_i32_1 = arith.constant 0 : i32
    return %c0_i32, %c0_i32_0 : i32, i32
  }
  func.func @transform_9(%arg0: i32) -> (i32, i32) {
    %c0_i32 = arith.constant 0 : i32
    %c0_i32_0 = arith.constant 0 : i32
    return %arg0, %c0_i32 : i32, i32
  }
}

</mosaic_0001>

<bundles_post_ra>
// kernel: linear_net_forward.1
= control target key start
LH: loop header
LB: loop body
LE: loop exit
PB: predicated region body
PF: predicated region fallthrough
CT: control target
= control target key end

     0   :  { %14 = vsyncpa [#allocation3], 0  ;;  %s1676_s0 = inlined_call_operand.vmem [shape: bf16[128,128], index: 0, kind: input, shape index: {}]   ;;  %s1677_s1 = inlined_call_operand.vmem [shape: bf16[128,128], index: 1, kind: input, shape index: {}]   ;;  %s1678_s2 = inlined_call_operand.vmem [shape: f32[1,128], index: 2, kind: input, shape index: {}]   ;;  %s1679_s3 = inlined_call_operand.hbm [shape: bf16[128,256], index: 3, kind: input, shape index: {}]   ;;  %s1680_s4 = inlined_call_operand.vmem [shape: f32[1,256], index: 4, kind: input, shape index: {}]   ;;  %s1681_s5 = inlined_call_operand.hbm [shape: bf16[256,128], index: 5, kind: input, shape index: {}]   ;;  %s1682_s6 = inlined_call_operand.vmem [shape: f32[1,128], index: 6, kind: input, shape index: {}]   ;;  %s1683_s7 = inlined_call_operand.hbm [shape: bf16[128,128], index: 7, kind: input, shape index: {}]   ;;  %s1684_s8 = inlined_call_operand.vmem [shape: f32[1,128], index: 8, kind: input, shape index: {}]   ;;  %s1685_s9 = inlined_call_operand.vmem [shape: f32[128,128], index: 9, kind: output, shape index: {}]  }
   0x1   :  { %15 = vsyncpa [#allocation5], 0  ;;  %s1406_s30 = smov [#allocation4]   ;;  %s1336_s13 = scalar_lea.hbm %s1681_s5, 2048 }
   0x2   :  { %s41_s10 = sshll.u32 %s1406_s30, 4  ;;  %p1337_p0 = scmp.ne.s32.totalorder %s1681_s5, %s1336_s13  ;;  %s42_s10 = int_to_ptr.vmem [resolvable:$true] %s41_s10 }
   0x3   :  { %p1340_p1 = scmp.lt.u32.totalorder %s1336_s13, %s1681_s5 }
   0x5   :  { %p1342_p2 = pnand %p1340_p1, %p1337_p0 }
   0x7   :  { %1345 = shalt.err (!%p1342_p2)
}
   0x8   :  { %s1346_s18 = scalar_lea.vmem %s42_s10, 2048  ;;  %p1351_p4 = scmp.lt.s32.totalorder %s42_s10, %s42_s10 }
   0x9   :  { %p1347_p3 = scmp.ne.s32.totalorder %s42_s10, %s1346_s18  ;;  %p1352_p5 = scmp.lt.s32.totalorder %s1346_s18, %s1346_s18 }
   0xb   :  { %p1353_p6 = por %p1352_p5, %p1351_p4 }
   0xd   :  { %p1354_p7 = pnand %p1353_p6, %p1347_p3 }
   0xf   :  { %1357 = shalt.err (!%p1354_p7)
}
  0x10   :  { %s1407_s19 = smov 64   ;;  %s1408_s20 = smov 4  }
  0x11   :  { %47 = dma.hbm_to_vmem [thread:$0]  %s1681_s5, 2048, %s42_s10, [#allocation5], %s1407_s19, %s1407_s19, %s1408_s20  }
  0x12   :  { %s1409_s23 = smov [#allocation2]   ;;  %s1358_s27 = scalar_lea.hbm %s1679_s3, 2048 }
  0x13   :  { %s27_s24 = sshll.u32 %s1409_s23, 4  ;;  %p1359_p8 = scmp.ne.s32.totalorder %s1679_s3, %s1358_s27  ;;  %s28_s24 = int_to_ptr.vmem [resolvable:$true] %s27_s24 }
  0x14   :  { %p1362_p9 = scmp.lt.u32.totalorder %s1358_s27, %s1679_s3 }
  0x16   :  { %p1364_p10 = pnand %p1362_p9, %p1359_p8 }
  0x18   :  { %1367 = shalt.err (!%p1364_p10)
}
  0x19   :  { %s1368_s12 = scalar_lea.vmem %s28_s24, 2048  ;;  %p1373_p12 = scmp.lt.s32.totalorder %s28_s24, %s28_s24 }
  0x1a   :  { %p1369_p11 = scmp.ne.s32.totalorder %s28_s24, %s1368_s12  ;;  %p1374_p13 = scmp.lt.s32.totalorder %s1368_s12, %s1368_s12 }
  0x1c   :  { %p1375_p0 = por %p1374_p13, %p1373_p12 }
  0x1e   :  { %p1376_p1 = pnand %p1375_p0, %p1369_p11 }
  0x20   :  { %1379 = shalt.err (!%p1376_p1)
}
  0x21   :  { %s1410_s5 = smov 128   ;;  %s1411_s10 = smov 8  }
  0x22   :  { %33 = dma.hbm_to_vmem [thread:$0]  %s1679_s3, 2048, %s28_s24, [#allocation3], %s1410_s5, %s1410_s5, %s1411_s10  }
  0x23   :  { %s1412_s15 = smov [#allocation6]   ;;  %s1380_s21 = scalar_lea.hbm %s1683_s7, 1024 }
  0x24   :  { %s55_s16 = sshll.u32 %s1412_s15, 4  ;;  %p1381_p2 = scmp.ne.s32.totalorder %s1683_s7, %s1380_s21  ;;  %s56_s16 = int_to_ptr.vmem [resolvable:$true] %s55_s16 }
  0x25   :  { %p1384_p3 = scmp.lt.u32.totalorder %s1380_s21, %s1683_s7 }
  0x27   :  { %p1386_p4 = pnand %p1384_p3, %p1381_p2 }
  0x29   :  { %1389 = shalt.err (!%p1386_p4)
}
  0x2a   :  { %s1390_s27 = scalar_lea.vmem %s56_s16, 1024  ;;  %p1395_p6 = scmp.lt.s32.totalorder %s56_s16, %s56_s16 }
  0x2b   :  { %p1391_p5 = scmp.ne.s32.totalorder %s56_s16, %s1390_s27  ;;  %p1396_p7 = scmp.lt.s32.totalorder %s1390_s27, %s1390_s27 }
  0x2d   :  { %p1397_p8 = por %p1396_p7, %p1395_p6 }
  0x2f   :  { %p1398_p9 = pnand %p1397_p8, %p1391_p5 }
  0x31   :  { %1401 = shalt.err (!%p1398_p9)
}
  0x32   :  { %61 = dma.hbm_to_vmem [thread:$0]  %s1683_s7, 1024, %s56_s16, [#allocation5], %s1407_s19, %s1407_s19, %s1408_s20  }
  0x33   :  { %1402 = dma.done.wait [#allocation3], 2048  }
  0x34   :  { %1403 = vsyncadd [#allocation3], 4294965248 }
  0x35   :  { %1404 = dma.done.wait [#allocation5], 3072  }
  0x36   :  { %1405 = vsyncadd [#allocation5], 4294964224  ;;  %v1272_v0 = vld [vmem:[%s1677_s1] sm:$0xff]   ;;  %v1273_v1 = vld [vmem:[%s1677_s1 + $0x8] sm:$0xff]   ;;  %v1413_v32 = vmov 0  }
  0x37   :  { %1200 = vmatprep.subr.bf16.mxu0 %v1272_v0  ;;  %v1274_v2 = vld [vmem:[%s1677_s1 + $0x10] sm:$0xff]   ;;  %v1275_v3 = vld [vmem:[%s1677_s1 + $0x18] sm:$0xff]   ;;  %v1280_v4 = vld [vmem:[%s1676_s0] sm:$0xff]   ;;  %470 = vmatprep.mubr.bf16.mxu1 %v1413_v32 }
  0x38   :  { %1201 = vmatpush3.bf16.msra.mxu0 %v1272_v0  ;;  %1216 = vmatprep.mubr.bf16.mxu0 %v1280_v4  ;;  %v1276_v5 = vld [vmem:[%s1677_s1 + $0x20] sm:$0xff]   ;;  %v1277_v6 = vld [vmem:[%s1677_s1 + $0x28] sm:$0xff]   ;;  %v1291_v9 = vld [vmem:[#allocation2 + $0x14] ss:$8 sps:$4 sm:$0xff]  }
  0x39   :  { %1202 = vmatprep.subr.bf16.mxu0 %v1273_v1  ;;  %v1288_v7 = vld [vmem:[#allocation2 + $0x4] ss:$8 sps:$4 sm:$0xff]   ;;  %v1290_v8 = vld [vmem:[#allocation2] ss:$8 sps:$4 sm:$0xff]   ;;  %v1278_v10 = vld [vmem:[%s1677_s1 + $0x30] sm:$0xff]  }
  0x3a   :  { %438 = vmatprep.subr.bf16.mxu1 %v1288_v7  ;;  %v1293_v11 = vld [vmem:[#allocation2 + $0x10] ss:$8 sps:$4 sm:$0xff]   ;;  %v1294_v12 = vld [vmem:[#allocation2 + $0x24] ss:$8 sps:$4 sm:$0xff]   ;;  %v1296_v14 = vld [vmem:[#allocation2 + $0x20] ss:$8 sps:$4 sm:$0xff]  }
  0x3b   :  { %439 = vmatpush1.bf16.msra.mxu1 %v1290_v8  ;;  %v1279_v13 = vld [vmem:[%s1677_s1 + $0x38] sm:$0xff]   ;;  %v1300_v17 = vld [vmem:[#allocation2 + $0x44] ss:$8 sps:$4 sm:$0xff]   ;;  %v1282_v19 = vld [vmem:[%s1676_s0 + $0x10] sm:$0xff]  }
  0x3c   :  { %1203 = vmatpush3.bf16.msra.mxu0 %v1273_v1  ;;  %440 = vmatprep.subr.bf16.mxu1 %v1291_v9  ;;  %v1297_v15 = vld [vmem:[#allocation2 + $0x34] ss:$8 sps:$4 sm:$0xff]   ;;  %v1299_v16 = vld [vmem:[#allocation2 + $0x30] ss:$8 sps:$4 sm:$0xff]   ;;  %v1281_v18 = vld [vmem:[%s1676_s0 + $0x8] sm:$0xff]  }
  0x3d   :  { %1204 = vmatprep.subr.bf16.mxu0 %v1274_v2  ;;  %v1302_v20 = vld [vmem:[#allocation2 + $0x40] ss:$8 sps:$4 sm:$0xff]   ;;  %v1303_v21 = vld [vmem:[#allocation2 + $0x54] ss:$8 sps:$4 sm:$0xff]   ;;  %v1305_v22 = vld [vmem:[#allocation2 + $0x50] ss:$8 sps:$4 sm:$0xff]  }
  0x3e   :  { %v1283_v23 = vld [vmem:[%s1676_s0 + $0x18] sm:$0xff]   ;;  %v1284_v24 = vld [vmem:[%s1676_s0 + $0x20] sm:$0xff]   ;;  %v1285_v25 = vld [vmem:[%s1676_s0 + $0x28] sm:$0xff]  }
  0x3f   :  { %441 = vmatpush1.bf16.msra.mxu1 %v1293_v11  ;;  %v1286_v26 = vld [vmem:[%s1676_s0 + $0x30] sm:$0xff]   ;;  %v1287_v27 = vld [vmem:[%s1676_s0 + $0x38] sm:$0xff]   ;;  %v1306_v28 = vld [vmem:[#allocation2 + $0x64] ss:$8 sps:$4 sm:$0xff]  }
  0x40   :  { %1205 = vmatpush3.bf16.msra.mxu0 %v1274_v2  ;;  %442 = vmatprep.subr.bf16.mxu1 %v1294_v12  ;;  %v1308_v29 = vld [vmem:[#allocation2 + $0x60] ss:$8 sps:$4 sm:$0xff]   ;;  %v1309_v30 = vld [vmem:[#allocation2 + $0x74] ss:$8 sps:$4 sm:$0xff]   ;;  %v1311_v31 = vld [vmem:[#allocation2 + $0x70] ss:$8 sps:$4 sm:$0xff]  }
  0x41   :  { %1206 = vmatprep.subr.bf16.mxu0 %v1275_v3  ;;  %v1312_v33 = vld [vmem:[#allocation4 + $0x40] sm:$0xff]   ;;  %v1314_v35 = vld [vmem:[#allocation4 + $0x48] sm:$0xff]   ;;  %v1316_v37 = vld [vmem:[#allocation4 + $0x50] sm:$0xff]  }
  0x42   :  { %v1313_v34 = vld [vmem:[#allocation4] sm:$0xff]   ;;  %v1315_v36 = vld [vmem:[#allocation4 + $0x8] sm:$0xff]   ;;  %v1317_v38 = vld [vmem:[#allocation4 + $0x10] sm:$0xff]  }
  0x43   :  { %443 = vmatpush1.bf16.msra.mxu1 %v1296_v14  ;;  %v1318_v39 = vld [vmem:[#allocation4 + $0x58] sm:$0xff]   ;;  %v1320_v41 = vld [vmem:[#allocation4 + $0x60] sm:$0xff]   ;;  %v1322_v43 = vld [vmem:[#allocation4 + $0x68] sm:$0xff]  }
  0x44   :  { %1207 = vmatpush3.bf16.msra.mxu0 %v1275_v3  ;;  %444 = vmatprep.subr.bf16.mxu1 %v1297_v15  ;;  %v1319_v40 = vld [vmem:[#allocation4 + $0x18] sm:$0xff]   ;;  %v1321_v42 = vld [vmem:[#allocation4 + $0x20] sm:$0xff]   ;;  %v1323_v44 = vld [vmem:[#allocation4 + $0x28] sm:$0xff]  }
  0x45   :  { %1208 = vmatprep.subr.bf16.mxu0 %v1276_v5  ;;  %v1045_v45 = vld [vmem:[%s1678_s2] ss:$0 sm:$0xff] }
  0x47   :  { %445 = vmatpush1.bf16.msra.mxu1 %v1299_v16 }
  0x48   :  { %1209 = vmatpush3.bf16.msra.mxu0 %v1276_v5  ;;  %446 = vmatprep.subr.bf16.mxu1 %v1300_v17 }
  0x49   :  { %1210 = vmatprep.subr.bf16.mxu0 %v1277_v6 }
  0x4b   :  { %447 = vmatpush1.bf16.msra.mxu1 %v1302_v20 }
  0x4c   :  { %1211 = vmatpush3.bf16.msra.mxu0 %v1277_v6  ;;  %448 = vmatprep.subr.bf16.mxu1 %v1303_v21 }
  0x4d   :  { %1212 = vmatprep.subr.bf16.mxu0 %v1278_v10 }
  0x4f   :  { %449 = vmatpush1.bf16.msra.mxu1 %v1305_v22 }
  0x50   :  { %1213 = vmatpush3.bf16.msra.mxu0 %v1278_v10  ;;  %450 = vmatprep.subr.bf16.mxu1 %v1306_v28 }
  0x51   :  { %1214 = vmatprep.subr.bf16.mxu0 %v1279_v13 }
  0x53   :  { %451 = vmatpush1.bf16.msra.mxu1 %v1308_v29 }
  0x54   :  { %1215 = vmatpush3.bf16.msra.mxu0 %v1279_v13  ;;  %452 = vmatprep.subr.bf16.mxu1 %v1309_v30 }
  0x55   :  { %1120 = vmatprep.subr.bf16.mxu0 %v1312_v33 }
  0x57   :  { %1217 = vmatmul.mubr.bf16.vlgmr.msra.gmra.mrb[0].mxu0 %v1281_v18  ;;  %453 = vmatpush1.bf16.msra.mxu1 %v1311_v31 }
  0x58   :  { %1220 = vmatprep.mubr.bf16.mxu0 %v1282_v19  ;;  %1121 = vmatpush3.bf16.msra.mxu0 %v1313_v34 }
  0x59   :  { %1122 = vmatprep.subr.bf16.mxu0 %v1314_v35 }
  0x5c   :  { %1123 = vmatpush3.bf16.msra.mxu0 %v1315_v36 }
  0x5d   :  { %1124 = vmatprep.subr.bf16.mxu0 %v1316_v37 }
  0x5f   :  { %1221 = vmatmul.mubr.bf16.gmra.mrb[4].mxu0 %v1283_v23 }
  0x60   :  { %1224 = vmatprep.mubr.bf16.mxu0 %v1284_v24  ;;  %1125 = vmatpush3.bf16.msra.mxu0 %v1317_v38 }
  0x61   :  { %1126 = vmatprep.subr.bf16.mxu0 %v1318_v39  ;;  %v1324_v39 = vld [vmem:[#allocation4 + $0x70] sm:$0xff]  }
  0x64   :  { %1127 = vmatpush3.bf16.msra.mxu0 %v1319_v40  ;;  %v1325_v40 = vld [vmem:[#allocation4 + $0x30] sm:$0xff]  }
  0x65   :  { %1128 = vmatprep.subr.bf16.mxu0 %v1320_v41  ;;  %v1326_v41 = vld [vmem:[#allocation4 + $0x78] sm:$0xff]  }
  0x67   :  { %1225 = vmatmul.mubr.bf16.gmra.mrb[8].mxu0 %v1285_v25 }
  0x68   :  { %1228 = vmatprep.mubr.bf16.mxu0 %v1286_v26  ;;  %1129 = vmatpush3.bf16.msra.mxu0 %v1321_v42  ;;  %v1327_v42 = vld [vmem:[#allocation4 + $0x38] sm:$0xff]  }
  0x69   :  { %1130 = vmatprep.subr.bf16.mxu0 %v1322_v43  ;;  %v1328_v43 = vld [vmem:[#allocation6] sm:$0xff]  }
  0x6a   :  { %1232 = vmatprep.subr.bf16.mxu1 %v1328_v43 }
  0x6c   :  { %1131 = vmatpush3.bf16.msra.mxu0 %v1323_v44  ;;  %v1329_v44 = vld [vmem:[#allocation6 + $0x8] sm:$0xff]  }
  0x6d   :  { %1132 = vmatprep.subr.bf16.mxu0 %v1324_v39 }
  0x6f   :  { %1229 = vmatmul.mubr.bf16.gmra.mrb[12].mxu0 %v1287_v27 }
  0x70   :  { %1133 = vmatpush3.bf16.msra.mxu0 %v1325_v40 }
  0x71   :  { %1134 = vmatprep.subr.bf16.mxu0 %v1326_v41 }
  0x74   :  { %1135 = vmatpush3.bf16.msra.mxu0 %v1327_v42 }
 0x12a   :  { %v1218_v46 = vpop.f32.mrb[0].mxu0 }
 0x12b   :  { %v252_v47 = vadd.f32 %v1218_v46, %v1045_v45  ;;  %v243_v48 = vpop.f32.mrb[1].mxu0  ;;  %v348_v46 = vlaneseq }
 0x12c   :  { %v244_v49 = vadd.f32 %v1045_v45, %v243_v48  ;;  %v1219_v50 = vpop.f32.mrb[2].mxu0  ;;  %v346_v48 = vld [vmem:[%s1680_s4] sm:$0x3] }
 0x12d   :  { %v255_v51 = vadd.f32 %v1219_v50, %v1045_v45  ;;  %v246_v52 = vpop.f32.mrb[3].mxu0  ;;  %v308_v54 = vmax.f32 %v252_v47, 0.0 }
 0x12e   :  { %v247_v53 = vadd.f32 %v1045_v45, %v246_v52  ;;  %v306_v56 = vmax.f32 %v244_v49, 0.0 }
 0x12f   :  { %v309_v55 = vmax.f32 %v255_v51, 0.0 }
 0x130   :  { %v307_v57 = vmax.f32 %v247_v53, 0.0 }
 0x131   :  { %v323_v58 = vpack.c.bf16 %v309_v55, %v308_v54 }
 0x132   :  { %v322_v59 = vpack.c.bf16 %v307_v57, %v306_v56  ;;  %v1222_v60 = vpop.f32.mrb[4].mxu0 }
 0x133   :  { %v268_v61 = vadd.f32 %v1222_v60, %v1045_v45  ;;  %v259_v62 = vpop.f32.mrb[5].mxu0 }
 0x134   :  { %471 = vmatmul.mubr.bf16.vlgmr.msra.gmra.mrb[0].mxu1 %v322_v59  ;;  %v260_v63 = vadd.f32 %v1045_v45, %v259_v62  ;;  %v1223_v0 = vpop.f32.mrb[6].mxu0 }
 0x135   :  { %v312_v1 = vmax.f32 %v268_v61, 0.0  ;;  %v271_v2 = vadd.f32 %v1223_v0, %v1045_v45  ;;  %v262_v3 = vpop.f32.mrb[7].mxu0  ;;  %480 = vmatprep.mubr.bf16.mxu1 %v1413_v32  ;;  %1233 = vmatpush3.bf16.msra.mxu1 %v1328_v43 }
 0x136   :  { %v310_v4 = vmax.f32 %v260_v63, 0.0  ;;  %v263_v5 = vadd.f32 %v1045_v45, %v262_v3  ;;  %1234 = vmatprep.subr.bf16.mxu1 %v1329_v44 }
 0x137   :  { %v313_v6 = vmax.f32 %v271_v2, 0.0 }
 0x138   :  { %v311_v7 = vmax.f32 %v263_v5, 0.0 }
 0x139   :  { %v325_v8 = vpack.c.bf16 %v313_v6, %v312_v1  ;;  %1235 = vmatpush3.bf16.msra.mxu1 %v1329_v44 }
 0x13a   :  { %v324_v9 = vpack.c.bf16 %v311_v7, %v310_v4  ;;  %v1226_v10 = vpop.f32.mrb[8].mxu0 }
 0x13b   :  { %v284_v11 = vadd.f32 %v1226_v10, %v1045_v45  ;;  %v275_v12 = vpop.f32.mrb[9].mxu0 }
 0x13c   :  { %481 = vmatmul.mubr.bf16.gmra.mrb[4].mxu1 %v323_v58  ;;  %v276_v13 = vadd.f32 %v1045_v45, %v275_v12  ;;  %v1227_v14 = vpop.f32.mrb[10].mxu0 }
 0x13d   :  { %490 = vmatprep.mubr.bf16.mxu1 %v1413_v32  ;;  %v316_v15 = vmax.f32 %v284_v11, 0.0  ;;  %v287_v16 = vadd.f32 %v1227_v14, %v1045_v45  ;;  %v278_v17 = vpop.f32.mrb[11].mxu0 }
 0x13e   :  { %v314_v18 = vmax.f32 %v276_v13, 0.0  ;;  %v279_v19 = vadd.f32 %v1045_v45, %v278_v17 }
 0x13f   :  { %v317_v20 = vmax.f32 %v287_v16, 0.0 }
 0x140   :  { %v315_v21 = vmax.f32 %v279_v19, 0.0 }
 0x141   :  { %v327_v22 = vpack.c.bf16 %v317_v20, %v316_v15 }
 0x142   :  { %v326_v23 = vpack.c.bf16 %v315_v21, %v314_v18  ;;  %v1230_v24 = vpop.f32.mrb[12].mxu0 }
 0x143   :  { %v300_v25 = vadd.f32 %v1230_v24, %v1045_v45  ;;  %v291_v26 = vpop.f32.mrb[13].mxu0 }
 0x144   :  { %491 = vmatmul.mubr.bf16.gmra.mrb[8].mxu1 %v324_v9  ;;  %v292_v27 = vadd.f32 %v1045_v45, %v291_v26  ;;  %v1231_v28 = vpop.f32.mrb[14].mxu0 }
 0x145   :  { %500 = vmatprep.mubr.bf16.mxu1 %v1413_v32  ;;  %v320_v29 = vmax.f32 %v300_v25, 0.0  ;;  %v303_v30 = vadd.f32 %v1231_v28, %v1045_v45  ;;  %v294_v31 = vpop.f32.mrb[15].mxu0 }
 0x146   :  { %v318_v33 = vmax.f32 %v292_v27, 0.0  ;;  %v295_v34 = vadd.f32 %v1045_v45, %v294_v31  ;;  %v1330_v45 = vld [vmem:[#allocation6 + $0x10] sm:$0xff]  }
 0x147   :  { %v321_v35 = vmax.f32 %v303_v30, 0.0  ;;  %1236 = vmatprep.subr.bf16.mxu1 %v1330_v45 }
 0x148   :  { %v319_v36 = vmax.f32 %v295_v34, 0.0  ;;  %1237 = vmatpush3.bf16.msra.mxu1 %v1330_v45 }
 0x149   :  { %v329_v37 = vpack.c.bf16 %v321_v35, %v320_v29 }
 0x14a   :  { %v328_v38 = vpack.c.bf16 %v319_v36, %v318_v33 }
 0x14c   :  { %501 = vmatmul.mubr.bf16.gmra.mrb[12].mxu1 %v325_v8 }
 0x14d   :  { %510 = vmatprep.mubr.bf16.mxu1 %v1413_v32 }
 0x154   :  { %511 = vmatmul.mubr.bf16.gmra.mrb[16].mxu1 %v326_v23 }
 0x155   :  { %520 = vmatprep.mubr.bf16.mxu1 %v1413_v32 }
 0x15c   :  { %521 = vmatmul.mubr.bf16.gmra.mrb[20].mxu1 %v327_v22 }
 0x15d   :  { %530 = vmatprep.mubr.bf16.mxu1 %v1413_v32 }
 0x164   :  { %531 = vmatmul.mubr.bf16.gmra.mrb[24].mxu1 %v328_v38 }
 0x165   :  { %540 = vmatprep.mubr.bf16.mxu1 %v1413_v32  ;;  %v349_v32 = vshrl.u32 %v348_v46, 7 }
 0x167   :  { %v350_v47 = vsub.s32 0, %v349_v32  ;;  %v354_v49 = vsub.s32 1, %v349_v32 }
 0x169   :  { %v1568_v50 = vrot.slane %v346_v48, %v350_v47  ;;  %v1570_v51 = vrot.slane %v346_v48, %v354_v49 }
 0x16c   :  { %541 = vmatmul.mubr.bf16.gmra.mrb[28].mxu1 %v329_v37 }
 0x207   :  { %v472_v52 = vpop.f32.mrb[0].mxu1 }
 0x208   :  { %v473_v53 = vadd.f32 %v472_v52, %v1568_v50  ;;  %v474_v54 = vpop.f32.mrb[1].mxu1 }
 0x209   :  { %v475_v55 = vadd.f32 %v474_v54, %v1570_v51  ;;  %v476_v56 = vpop.f32.mrb[2].mxu1 }
 0x20a   :  { %v477_v57 = vadd.f32 %v476_v56, %v1568_v50  ;;  %v478_v58 = vpop.f32.mrb[3].mxu1  ;;  %v551_v60 = vmax.f32 %v473_v53, 0.0 }
 0x20b   :  { %v479_v59 = vadd.f32 %v478_v58, %v1570_v51  ;;  %v552_v62 = vmax.f32 %v475_v55, 0.0 }
 0x20c   :  { %v553_v61 = vmax.f32 %v477_v57, 0.0 }
 0x20d   :  { %v554_v63 = vmax.f32 %v479_v59, 0.0 }
 0x20e   :  { %v583_v0 = vpack.c.bf16 %v553_v61, %v551_v60 }
 0x20f   :  { %v584_v1 = vpack.c.bf16 %v554_v63, %v552_v62  ;;  %v482_v2 = vpop.f32.mrb[4].mxu1 }
 0x210   :  { %v483_v3 = vadd.f32 %v482_v2, %v1568_v50  ;;  %v484_v4 = vpop.f32.mrb[5].mxu1 }
 0x211   :  { %v485_v5 = vadd.f32 %v484_v4, %v1570_v51  ;;  %v486_v6 = vpop.f32.mrb[6].mxu1  ;;  %766 = vmatprep.mubr.bf16.mxu0 %v584_v1 }
 0x212   :  { %v487_v7 = vadd.f32 %v486_v6, %v1568_v50  ;;  %v488_v8 = vpop.f32.mrb[7].mxu1  ;;  %767 = vmatmul.mubr.bf16.vlgmr.msra.gmra.mrb[16].mxu0 %v583_v0  ;;  %v555_v10 = vmax.f32 %v483_v3, 0.0 }
 0x213   :  { %v489_v9 = vadd.f32 %v488_v8, %v1570_v51  ;;  %v556_v12 = vmax.f32 %v485_v5, 0.0 }
 0x214   :  { %v557_v11 = vmax.f32 %v487_v7, 0.0 }
 0x215   :  { %v558_v13 = vmax.f32 %v489_v9, 0.0 }
 0x216   :  { %v585_v14 = vpack.c.bf16 %v557_v11, %v555_v10 }
 0x217   :  { %v586_v15 = vpack.c.bf16 %v558_v13, %v556_v12  ;;  %v492_v16 = vpop.f32.mrb[8].mxu1 }
 0x218   :  { %v493_v17 = vadd.f32 %v492_v16, %v1568_v50  ;;  %v494_v18 = vpop.f32.mrb[9].mxu1 }
 0x219   :  { %v495_v19 = vadd.f32 %v494_v18, %v1570_v51  ;;  %v496_v20 = vpop.f32.mrb[10].mxu1  ;;  %774 = vmatprep.mubr.bf16.mxu0 %v586_v15 }
 0x21a   :  { %v497_v21 = vadd.f32 %v496_v20, %v1568_v50  ;;  %v498_v22 = vpop.f32.mrb[11].mxu1  ;;  %775 = vmatmul.mubr.bf16.gmra.mrb[20].mxu0 %v585_v14  ;;  %v559_v24 = vmax.f32 %v493_v17, 0.0 }
 0x21b   :  { %v499_v23 = vadd.f32 %v498_v22, %v1570_v51  ;;  %v560_v26 = vmax.f32 %v495_v19, 0.0 }
 0x21c   :  { %v561_v25 = vmax.f32 %v497_v21, 0.0 }
 0x21d   :  { %v562_v27 = vmax.f32 %v499_v23, 0.0 }
 0x21e   :  { %v587_v28 = vpack.c.bf16 %v561_v25, %v559_v24 }
 0x21f   :  { %v588_v29 = vpack.c.bf16 %v562_v27, %v560_v26  ;;  %v502_v30 = vpop.f32.mrb[12].mxu1 }
 0x220   :  { %v503_v31 = vadd.f32 %v502_v30, %v1568_v50  ;;  %v504_v33 = vpop.f32.mrb[13].mxu1 }
 0x221   :  { %v505_v34 = vadd.f32 %v504_v33, %v1570_v51  ;;  %v506_v35 = vpop.f32.mrb[14].mxu1  ;;  %782 = vmatprep.mubr.bf16.mxu0 %v588_v29 }
 0x222   :  { %v507_v36 = vadd.f32 %v506_v35, %v1568_v50  ;;  %v508_v37 = vpop.f32.mrb[15].mxu1  ;;  %783 = vmatmul.mubr.bf16.gmra.mrb[24].mxu0 %v587_v28  ;;  %v563_v39 = vmax.f32 %v503_v31, 0.0 }
 0x223   :  { %v509_v38 = vadd.f32 %v508_v37, %v1570_v51  ;;  %v564_v41 = vmax.f32 %v505_v34, 0.0 }
 0x224   :  { %v565_v40 = vmax.f32 %v507_v36, 0.0 }
 0x225   :  { %v566_v42 = vmax.f32 %v509_v38, 0.0 }
 0x226   :  { %v589_v43 = vpack.c.bf16 %v565_v40, %v563_v39  ;;  %v1331_v39 = vld [vmem:[#allocation6 + $0x18] sm:$0xff]   ;;  %v1332_v40 = vld [vmem:[#allocation6 + $0x20] sm:$0xff]  }
 0x227   :  { %v590_v44 = vpack.c.bf16 %v566_v42, %v564_v41  ;;  %v512_v45 = vpop.f32.mrb[16].mxu1  ;;  %1238 = vmatprep.subr.bf16.mxu1 %v1331_v39  ;;  %v1333_v41 = vld [vmem:[#allocation6 + $0x28] sm:$0xff]  }
 0x228   :  { %v513_v46 = vadd.f32 %v512_v45, %v1568_v50  ;;  %v514_v32 = vpop.f32.mrb[17].mxu1  ;;  %1239 = vmatpush3.bf16.msra.mxu1 %v1331_v39 }
 0x229   :  { %v515_v47 = vadd.f32 %v514_v32, %v1570_v51  ;;  %v516_v48 = vpop.f32.mrb[18].mxu1  ;;  %790 = vmatprep.mubr.bf16.mxu0 %v590_v44  ;;  %1240 = vmatprep.subr.bf16.mxu1 %v1332_v40 }
 0x22a   :  { %v517_v49 = vadd.f32 %v516_v48, %v1568_v50  ;;  %v518_v52 = vpop.f32.mrb[19].mxu1  ;;  %791 = vmatmul.mubr.bf16.gmra.mrb[28].mxu0 %v589_v43  ;;  %v567_v54 = vmax.f32 %v513_v46, 0.0  ;;  %v1607_v43 = vld [vmem:[%s1682_s6] ss:$0 sm:$0xff] }
 0x22b   :  { %v519_v53 = vadd.f32 %v518_v52, %v1570_v51  ;;  %v568_v56 = vmax.f32 %v515_v47, 0.0 }
 0x22c   :  { %v569_v55 = vmax.f32 %v517_v49, 0.0  ;;  %1241 = vmatpush3.bf16.msra.mxu1 %v1332_v40 }
 0x22d   :  { %v570_v57 = vmax.f32 %v519_v53, 0.0  ;;  %1242 = vmatprep.subr.bf16.mxu1 %v1333_v41 }
 0x22e   :  { %v591_v58 = vpack.c.bf16 %v569_v55, %v567_v54 }
 0x22f   :  { %v592_v59 = vpack.c.bf16 %v570_v57, %v568_v56  ;;  %v522_v60 = vpop.f32.mrb[20].mxu1 }
 0x230   :  { %v523_v61 = vadd.f32 %v522_v60, %v1568_v50  ;;  %v524_v62 = vpop.f32.mrb[21].mxu1  ;;  %1243 = vmatpush3.bf16.msra.mxu1 %v1333_v41 }
 0x231   :  { %v525_v63 = vadd.f32 %v524_v62, %v1570_v51  ;;  %v526_v0 = vpop.f32.mrb[22].mxu1  ;;  %798 = vmatprep.mubr.bf16.mxu0 %v592_v59 }
 0x232   :  { %v527_v1 = vadd.f32 %v526_v0, %v1568_v50  ;;  %v528_v2 = vpop.f32.mrb[23].mxu1  ;;  %799 = vmatmul.mubr.bf16.gmra.mrb[32].mxu0 %v591_v58  ;;  %v571_v4 = vmax.f32 %v523_v61, 0.0 }
 0x233   :  { %v529_v3 = vadd.f32 %v528_v2, %v1570_v51  ;;  %v572_v6 = vmax.f32 %v525_v63, 0.0 }
 0x234   :  { %v573_v5 = vmax.f32 %v527_v1, 0.0 }
 0x235   :  { %v574_v7 = vmax.f32 %v529_v3, 0.0 }
 0x236   :  { %v593_v8 = vpack.c.bf16 %v573_v5, %v571_v4 }
 0x237   :  { %v594_v9 = vpack.c.bf16 %v574_v7, %v572_v6  ;;  %v532_v10 = vpop.f32.mrb[24].mxu1 }
 0x238   :  { %v533_v11 = vadd.f32 %v532_v10, %v1568_v50  ;;  %v534_v12 = vpop.f32.mrb[25].mxu1 }
 0x239   :  { %v535_v13 = vadd.f32 %v534_v12, %v1570_v51  ;;  %v536_v14 = vpop.f32.mrb[26].mxu1  ;;  %806 = vmatprep.mubr.bf16.mxu0 %v594_v9 }
 0x23a   :  { %v537_v15 = vadd.f32 %v536_v14, %v1568_v50  ;;  %v538_v16 = vpop.f32.mrb[27].mxu1  ;;  %807 = vmatmul.mubr.bf16.gmra.mrb[36].mxu0 %v593_v8  ;;  %v575_v18 = vmax.f32 %v533_v11, 0.0 }
 0x23b   :  { %v539_v17 = vadd.f32 %v538_v16, %v1570_v51  ;;  %v576_v20 = vmax.f32 %v535_v13, 0.0 }
 0x23c   :  { %v577_v19 = vmax.f32 %v537_v15, 0.0 }
 0x23d   :  { %v578_v21 = vmax.f32 %v539_v17, 0.0 }
 0x23e   :  { %v595_v22 = vpack.c.bf16 %v577_v19, %v575_v18 }
 0x23f   :  { %v596_v23 = vpack.c.bf16 %v578_v21, %v576_v20  ;;  %v542_v24 = vpop.f32.mrb[28].mxu1 }
 0x240   :  { %v543_v25 = vadd.f32 %v542_v24, %v1568_v50  ;;  %v544_v26 = vpop.f32.mrb[29].mxu1 }
 0x241   :  { %v545_v27 = vadd.f32 %v544_v26, %v1570_v51  ;;  %v546_v28 = vpop.f32.mrb[30].mxu1  ;;  %814 = vmatprep.mubr.bf16.mxu0 %v596_v23 }
 0x242   :  { %v547_v29 = vadd.f32 %v546_v28, %v1568_v50  ;;  %v548_v30 = vpop.f32.mrb[31].mxu1  ;;  %815 = vmatmul.mubr.bf16.gmra.mrb[40].mxu0 %v595_v22  ;;  %v579_v33 = vmax.f32 %v543_v25, 0.0  ;;  %v1334_v50 = vld [vmem:[#allocation6 + $0x30] sm:$0xff]  }
 0x243   :  { %v549_v31 = vadd.f32 %v548_v30, %v1570_v51  ;;  %v580_v35 = vmax.f32 %v545_v27, 0.0  ;;  %1244 = vmatprep.subr.bf16.mxu1 %v1334_v50  ;;  %v1335_v51 = vld [vmem:[#allocation6 + $0x38] sm:$0xff]  }
 0x244   :  { %v581_v34 = vmax.f32 %v547_v29, 0.0  ;;  %1245 = vmatpush3.bf16.msra.mxu1 %v1334_v50 }
 0x245   :  { %v582_v36 = vmax.f32 %v549_v31, 0.0  ;;  %1246 = vmatprep.subr.bf16.mxu1 %v1335_v51 }
 0x246   :  { %v597_v37 = vpack.c.bf16 %v581_v34, %v579_v33 }
 0x247   :  { %v598_v38 = vpack.c.bf16 %v582_v36, %v580_v35 }
 0x248   :  { %1247 = vmatpush3.bf16.msra.mxu1 %v1335_v51 }
 0x249   :  { %822 = vmatprep.mubr.bf16.mxu0 %v598_v38 }
 0x24a   :  { %823 = vmatmul.mubr.bf16.gmra.mrb[44].mxu0 %v597_v37 }
 0x2e5   :  { %v1136_v42 = vpop.f32.mrb[16].mxu0 }
 0x2e6   :  { %v1137_v44 = vpop.f32.mrb[17].mxu0 }
 0x2e7   :  { %v1138_v45 = vadd.f32 %v1137_v44, %v1136_v42  ;;  %v1139_v46 = vpop.f32.mrb[18].mxu0 }
 0x2e8   :  { %v1140_v32 = vpop.f32.mrb[19].mxu0 }
 0x2e9   :  { %v769_v47 = vadd.f32 %v1138_v45, %v1607_v43  ;;  %v1141_v48 = vadd.f32 %v1140_v32, %v1139_v46 }
 0x2eb   :  { %v772_v49 = vadd.f32 %v1141_v48, %v1607_v43  ;;  %v831_v52 = vmax.f32 %v769_v47, 0.0 }
 0x2ed   :  { %v832_v53 = vmax.f32 %v772_v49, 0.0  ;;  %v1142_v54 = vpop.f32.mrb[20].mxu0 }
 0x2ee   :  { %v1143_v55 = vpop.f32.mrb[21].mxu0 }
 0x2ef   :  { %v1144_v56 = vadd.f32 %v1143_v55, %v1142_v54  ;;  %v1145_v57 = vpop.f32.mrb[22].mxu0  ;;  %v847_v58 = vpack.c.bf16 %v832_v53, %v831_v52 }
 0x2f0   :  { %v1146_v59 = vpop.f32.mrb[23].mxu0 }
 0x2f1   :  { %v777_v60 = vadd.f32 %v1144_v56, %v1607_v43  ;;  %v1147_v61 = vadd.f32 %v1146_v59, %v1145_v57  ;;  %1248 = vmatprep.mubr.bf16.mxu1 %v847_v58 }
 0x2f3   :  { %v780_v62 = vadd.f32 %v1147_v61, %v1607_v43  ;;  %v833_v63 = vmax.f32 %v777_v60, 0.0 }
 0x2f5   :  { %v834_v0 = vmax.f32 %v780_v62, 0.0  ;;  %v1148_v1 = vpop.f32.mrb[24].mxu0 }
 0x2f6   :  { %v1149_v2 = vpop.f32.mrb[25].mxu0 }
 0x2f7   :  { %v848_v3 = vpack.c.bf16 %v834_v0, %v833_v63  ;;  %v1150_v4 = vadd.f32 %v1149_v2, %v1148_v1  ;;  %v1151_v5 = vpop.f32.mrb[26].mxu0 }
 0x2f8   :  { %v1152_v6 = vpop.f32.mrb[27].mxu0 }
 0x2f9   :  { %v785_v7 = vadd.f32 %v1150_v4, %v1607_v43  ;;  %v1153_v8 = vadd.f32 %v1152_v6, %v1151_v5  ;;  %1249 = vmatmul.mubr.bf16.vlgmr.msra.gmra.mrb[32].mxu1 %v848_v3  ;;  %v1095_v5 = vld [vmem:[%s1684_s8] ss:$0 sm:$0xff] }
 0x2fb   :  { %v788_v9 = vadd.f32 %v1153_v8, %v1607_v43  ;;  %v835_v10 = vmax.f32 %v785_v7, 0.0 }
 0x2fd   :  { %v836_v11 = vmax.f32 %v788_v9, 0.0  ;;  %v1154_v12 = vpop.f32.mrb[28].mxu0 }
 0x2fe   :  { %v1155_v13 = vpop.f32.mrb[29].mxu0 }
 0x2ff   :  { %v1156_v14 = vadd.f32 %v1155_v13, %v1154_v12  ;;  %v1157_v15 = vpop.f32.mrb[30].mxu0  ;;  %v849_v16 = vpack.c.bf16 %v836_v11, %v835_v10 }
 0x300   :  { %v1158_v17 = vpop.f32.mrb[31].mxu0 }
 0x301   :  { %v793_v18 = vadd.f32 %v1156_v14, %v1607_v43  ;;  %v1159_v19 = vadd.f32 %v1158_v17, %v1157_v15  ;;  %1252 = vmatprep.mubr.bf16.mxu1 %v849_v16 }
 0x303   :  { %v796_v20 = vadd.f32 %v1159_v19, %v1607_v43  ;;  %v837_v21 = vmax.f32 %v793_v18, 0.0 }
 0x305   :  { %v838_v22 = vmax.f32 %v796_v20, 0.0  ;;  %v1160_v23 = vpop.f32.mrb[32].mxu0 }
 0x306   :  { %v1161_v24 = vpop.f32.mrb[33].mxu0 }
 0x307   :  { %v1162_v25 = vadd.f32 %v1161_v24, %v1160_v23  ;;  %v1163_v26 = vpop.f32.mrb[34].mxu0  ;;  %v850_v27 = vpack.c.bf16 %v838_v22, %v837_v21 }
 0x308   :  { %v1164_v28 = vpop.f32.mrb[35].mxu0 }
 0x309   :  { %v801_v29 = vadd.f32 %v1162_v25, %v1607_v43  ;;  %v1165_v30 = vadd.f32 %v1164_v28, %v1163_v26  ;;  %1253 = vmatmul.mubr.bf16.gmra.mrb[36].mxu1 %v850_v27 }
 0x30b   :  { %v804_v31 = vadd.f32 %v1165_v30, %v1607_v43  ;;  %v839_v33 = vmax.f32 %v801_v29, 0.0 }
 0x30d   :  { %v840_v34 = vmax.f32 %v804_v31, 0.0  ;;  %v1166_v35 = vpop.f32.mrb[36].mxu0 }
 0x30e   :  { %v1167_v36 = vpop.f32.mrb[37].mxu0 }
 0x30f   :  { %v1168_v37 = vadd.f32 %v1167_v36, %v1166_v35  ;;  %v1169_v38 = vpop.f32.mrb[38].mxu0  ;;  %v851_v39 = vpack.c.bf16 %v840_v34, %v839_v33 }
 0x310   :  { %v1170_v40 = vpop.f32.mrb[39].mxu0 }
 0x311   :  { %v809_v41 = vadd.f32 %v1168_v37, %v1607_v43  ;;  %v1171_v50 = vadd.f32 %v1170_v40, %v1169_v38  ;;  %1256 = vmatprep.mubr.bf16.mxu1 %v851_v39 }
 0x313   :  { %v812_v51 = vadd.f32 %v1171_v50, %v1607_v43  ;;  %v841_v42 = vmax.f32 %v809_v41, 0.0 }
 0x315   :  { %v842_v44 = vmax.f32 %v812_v51, 0.0  ;;  %v1172_v45 = vpop.f32.mrb[40].mxu0 }
 0x316   :  { %v1173_v46 = vpop.f32.mrb[41].mxu0 }
 0x317   :  { %v1174_v32 = vadd.f32 %v1173_v46, %v1172_v45  ;;  %v1175_v47 = vpop.f32.mrb[42].mxu0  ;;  %v852_v48 = vpack.c.bf16 %v842_v44, %v841_v42 }
 0x318   :  { %v1176_v49 = vpop.f32.mrb[43].mxu0 }
 0x319   :  { %v817_v52 = vadd.f32 %v1174_v32, %v1607_v43  ;;  %v1177_v53 = vadd.f32 %v1176_v49, %v1175_v47  ;;  %1257 = vmatmul.mubr.bf16.gmra.mrb[40].mxu1 %v852_v48 }
 0x31b   :  { %v820_v54 = vadd.f32 %v1177_v53, %v1607_v43  ;;  %v843_v55 = vmax.f32 %v817_v52, 0.0 }
 0x31d   :  { %v844_v56 = vmax.f32 %v820_v54, 0.0  ;;  %v1178_v57 = vpop.f32.mrb[44].mxu0 }
 0x31e   :  { %v1179_v58 = vpop.f32.mrb[45].mxu0 }
 0x31f   :  { %v1180_v59 = vadd.f32 %v1179_v58, %v1178_v57  ;;  %v1181_v60 = vpop.f32.mrb[46].mxu0  ;;  %v853_v61 = vpack.c.bf16 %v844_v56, %v843_v55 }
 0x320   :  { %v1182_v62 = vpop.f32.mrb[47].mxu0 }
 0x321   :  { %v825_v63 = vadd.f32 %v1180_v59, %v1607_v43  ;;  %v1183_v0 = vadd.f32 %v1182_v62, %v1181_v60  ;;  %1260 = vmatprep.mubr.bf16.mxu1 %v853_v61 }
 0x323   :  { %v828_v1 = vadd.f32 %v1183_v0, %v1607_v43  ;;  %v845_v2 = vmax.f32 %v825_v63, 0.0 }
 0x325   :  { %v846_v3 = vmax.f32 %v828_v1, 0.0 }
 0x327   :  { %v854_v4 = vpack.c.bf16 %v846_v3, %v845_v2 }
 0x329   :  { %1261 = vmatmul.mubr.bf16.gmra.mrb[44].mxu1 %v854_v4 }
 0x3cc   :  { %v1250_v6 = vpop.f32.mrb[32].mxu1 }
 0x3cd   :  { %v969_v7 = vadd.f32 %v1250_v6, %v1095_v5  ;;  %v960_v8 = vpop.f32.mrb[33].mxu1 }
 0x3ce   :  { %v961_v9 = vadd.f32 %v1095_v5, %v960_v8  ;;  %v1251_v10 = vpop.f32.mrb[34].mxu1 }
 0x3cf   :  { %1025 = vst [vmem:[%s1685_s9 + $0x10] sm:$0xff] %v969_v7  ;;  %v972_v11 = vadd.f32 %v1251_v10, %v1095_v5  ;;  %v963_v12 = vpop.f32.mrb[35].mxu1 }
 0x3d0   :  { %1023 = vst [vmem:[%s1685_s9] sm:$0xff] %v961_v9  ;;  %v964_v43 = vadd.f32 %v1095_v5, %v963_v12 }
 0x3d1   :  { %1026 = vst [vmem:[%s1685_s9 + $0x18] sm:$0xff] %v972_v11 }
 0x3d2   :  { %1024 = vst [vmem:[%s1685_s9 + $0x8] sm:$0xff] %v964_v43 }
 0x3dc   :  { %v1254_v13 = vpop.f32.mrb[36].mxu1 }
 0x3dd   :  { %v985_v14 = vadd.f32 %v1254_v13, %v1095_v5  ;;  %v976_v15 = vpop.f32.mrb[37].mxu1 }
 0x3de   :  { %v977_v16 = vadd.f32 %v1095_v5, %v976_v15  ;;  %v1255_v17 = vpop.f32.mrb[38].mxu1 }
 0x3df   :  { %1029 = vst [vmem:[%s1685_s9 + $0x30] sm:$0xff] %v985_v14  ;;  %v988_v18 = vadd.f32 %v1255_v17, %v1095_v5  ;;  %v979_v19 = vpop.f32.mrb[39].mxu1 }
 0x3e0   :  { %1027 = vst [vmem:[%s1685_s9 + $0x20] sm:$0xff] %v977_v16  ;;  %v980_v20 = vadd.f32 %v1095_v5, %v979_v19 }
 0x3e1   :  { %1030 = vst [vmem:[%s1685_s9 + $0x38] sm:$0xff] %v988_v18 }
 0x3e2   :  { %1028 = vst [vmem:[%s1685_s9 + $0x28] sm:$0xff] %v980_v20 }
 0x3ec   :  { %v1258_v21 = vpop.f32.mrb[40].mxu1 }
 0x3ed   :  { %v1001_v22 = vadd.f32 %v1258_v21, %v1095_v5  ;;  %v992_v23 = vpop.f32.mrb[41].mxu1 }
 0x3ee   :  { %v993_v24 = vadd.f32 %v1095_v5, %v992_v23  ;;  %v1259_v25 = vpop.f32.mrb[42].mxu1 }
 0x3ef   :  { %1033 = vst [vmem:[%s1685_s9 + $0x50] sm:$0xff] %v1001_v22  ;;  %v1004_v26 = vadd.f32 %v1259_v25, %v1095_v5  ;;  %v995_v27 = vpop.f32.mrb[43].mxu1 }
 0x3f0   :  { %1031 = vst [vmem:[%s1685_s9 + $0x40] sm:$0xff] %v993_v24  ;;  %v996_v28 = vadd.f32 %v1095_v5, %v995_v27 }
 0x3f1   :  { %1034 = vst [vmem:[%s1685_s9 + $0x58] sm:$0xff] %v1004_v26 }
 0x3f2   :  { %1032 = vst [vmem:[%s1685_s9 + $0x48] sm:$0xff] %v996_v28 }
 0x3fc   :  { %v1262_v29 = vpop.f32.mrb[44].mxu1 }
 0x3fd   :  { %v1017_v30 = vadd.f32 %v1262_v29, %v1095_v5  ;;  %v1008_v31 = vpop.f32.mrb[45].mxu1 }
 0x3fe   :  { %v1009_v33 = vadd.f32 %v1095_v5, %v1008_v31  ;;  %v1263_v34 = vpop.f32.mrb[46].mxu1 }
 0x3ff   :  { %1037 = vst [vmem:[%s1685_s9 + $0x70] sm:$0xff] %v1017_v30  ;;  %v1020_v35 = vadd.f32 %v1263_v34, %v1095_v5  ;;  %v1011_v36 = vpop.f32.mrb[47].mxu1 }
 0x400   :  { %1035 = vst [vmem:[%s1685_s9 + $0x60] sm:$0xff] %v1009_v33  ;;  %v1012_v37 = vadd.f32 %v1095_v5, %v1011_v36 }
 0x401   :  { %1038 = vst [vmem:[%s1685_s9 + $0x78] sm:$0xff] %v1020_v35 }
 0x402   :  { %1036 = vst [vmem:[%s1685_s9 + $0x68] sm:$0xff] %v1012_v37 }
 0x403   :  { %1043 = vsyncpa [#allocation3], 1 }
 0x404   :  { %1044 = vsyncpa [#allocation5], 1 }

</bundles_post_ra>
